<compile_context>
chip_gen: v6e
topology: v6e:2x2x1
jax: 0.10.0
libtpu: 0.0.40
codegen_flags: <defaults>
</compile_context>

<pallas_src>
import math
import numpy as np
import jax
import jax.numpy as jnp
from jax import lax
from jax.experimental import pallas as pl
from jax.experimental.pallas import tpu as pltpu

EPS = 1e-5  # nn.BatchNorm1d default eps


def _sigmoid_eup(z):
    # sigmoid(z) = 0.5 * (1 + tanh(z / 2)); tanh issues on the EUP slot, which
    # removes the per-element VPU divide of 1 / (1 + exp(-z)) at no accuracy cost.
    return 0.5 * (jnp.tanh(0.5 * z) + 1.0)


def _roll_cols(x, delta, n, lane_aligned):
    """y[:, p] = x[:, (p + delta) mod n]; wrap positions are masked by the caller."""
    k = (-delta) % n
    if k == 0:
        return x
    if lane_aligned:
        # XLU lane rotation on the unpadded map: no relayout copies, co-issues
        # with the VPU tap multiply-adds.
        return pltpu.roll(x, k, axis=1)
    # Misaligned (HW % 128 != 0) fallback: concat of two lane slices.
    return jnp.concatenate([x[:, n - k:], x[:, :n - k]], axis=1)


def _make_linstats_kernel(b_true, tb):
    """Pass 1: Linear (bf16 MXU operands, f32 accum) + masked BatchNorm statistics."""

    def kernel(x_ref, wl_ref, bl_ref, lin_ref, ssum_ref, ssq_ref):
        i = pl.program_id(0)
        lin = jnp.dot(x_ref[...], wl_ref[...],
                      preferred_element_type=jnp.float32) + bl_ref[...]        # (TB, D)
        lin_ref[...] = lin

        # Rows >= b_true are batch padding; exclude them from the statistics.
        row = i * tb + lax.broadcasted_iota(jnp.int32, (tb, 1), 0)
        rmask = (row < b_true).astype(jnp.float32)
        linm = lin * rmask

        @pl.when(i == 0)
        def _():
            ssum_ref[...] = jnp.zeros_like(ssum_ref)
            ssq_ref[...] = jnp.zeros_like(ssq_ref)

        ssum_ref[...] += jnp.sum(linm, axis=0, keepdims=True)
        ssq_ref[...] += jnp.sum(linm * lin, axis=0, keepdims=True)

    return kernel


def _make_main_kernel(C, s, OC, b_true, tb, lane_aligned):
    """Pass 2: BN apply + ReLU + channel attention + spatial attention + output."""
    HW = s * s
    inv_b = 1.0 / float(b_true)
    inv_hw = 1.0 / float(HW)
    inv_c = 1.0 / float(C)

    def kernel(lin_ref, ssum_ref, ssq_ref, gamma_ref, beta_ref,
               w1c_ref, b1_ref, w2_ref, b2_ref, hcrd_ref, wcrd_ref,
               taps_ref, out_ref):
        # ---- BatchNorm1d (training batch statistics, biased variance) + ReLU.
        lin = lin_ref[...]                                                      # (TB, D)
        mean = ssum_ref[...] * inv_b
        var = jnp.maximum(ssq_ref[...] * inv_b - mean * mean, 0.0)              # clamp
        inv_std = lax.rsqrt(var + EPS)
        feat = jnp.maximum(gamma_ref[...] * (lin - mean) * inv_std
                           + beta_ref[...], 0.0)                                # (TB, D)
        # TODO(synk): BatchNorm1d running_mean/running_var buffer updates are not
        # materialized; they do not affect this forward pass.
        # TODO(synk): on v6e/v7x a bf16 elementwise phase (keeping the BN stats and
        # tap accumulator in f32) would ~double VPU throughput / halve VMEM; kept
        # f32 so the same kernel stays optimal on v5e (no bf16 VALU/EUP).

        f = [feat[:, c * HW:(c + 1) * HW] for c in range(C)]                    # (TB, HW)

        # ---- channel attention: global max/avg pool -> conv1 (3x3 on a 1x1 map
        # == its centre tap) -> ReLU -> conv2 (1x1).  Both pool branches share one
        # stacked MLP, computed as unrolled VPU broadcast-FMAs (no MXU pass).
        pool_max = jnp.concatenate(
            [jnp.max(f[c], axis=1, keepdims=True) for c in range(C)], axis=1)   # (TB, C)
        pool_avg = jnp.concatenate(
            [jnp.sum(f[c], axis=1, keepdims=True) * inv_hw for c in range(C)],
            axis=1)                                                             # (TB, C)
        pools = jnp.concatenate([pool_max, pool_avg], axis=0)                   # (2TB, C)

        hid = jnp.zeros((2 * tb, OC), jnp.float32) + b1_ref[...]
        for c in range(C):
            hid = hid + pools[:, c:c + 1] * w1c_ref[c:c + 1, :]
        hid = jnp.maximum(hid, 0.0)
        att = jnp.zeros((2 * tb, C), jnp.float32) + b2_ref[...]
        for o in range(OC):
            att = att + hid[:, o:o + 1] * w2_ref[o:o + 1, :]
        ca = _sigmoid_eup(att[:tb] + att[tb:])                                  # (TB, C)

        of = [f[c] * ca[:, c:c + 1] for c in range(C)]                          # Out_Feature

        # ---- spatial attention: channel mean/max -> Conv3 (3x3, pad=1) as nine
        # rolled multiply-adds; edge validity from (1, HW) coordinate vectors.
        avg_sp = of[0]
        max_sp = of[0]
        for c in range(1, C):
            avg_sp = avg_sp + of[c]
            max_sp = jnp.maximum(max_sp, of[c])
        avg_sp = avg_sp * inv_c

        h = hcrd_ref[...]                                                       # (1, HW)
        w = wcrd_ref[...]
        ok_h = {-1: h >= 1.0, 0: None, 1: h < float(s - 1)}
        ok_w = {-1: w >= 1.0, 0: None, 1: w < float(s - 1)}

        sp = taps_ref[18] + jnp.zeros((tb, HW), jnp.float32)                    # + b3
        t = 0
        for dh in (-1, 0, 1):
            for dw in (-1, 0, 1):
                delta = dh * s + dw
                contrib = (taps_ref[t] * _roll_cols(avg_sp, delta, HW, lane_aligned)
                           + taps_ref[9 + t] * _roll_cols(max_sp, delta, HW, lane_aligned))
                masks = [m for m in (ok_h[dh], ok_w[dw]) if m is not None]
                if masks:
                    m = masks[0] if len(masks) == 1 else jnp.logical_and(masks[0], masks[1])
                    contrib = jnp.where(m, contrib, 0.0)
                sp = sp + contrib
                t += 1
        sa = _sigmoid_eup(sp)                                                   # (TB, HW)

        # ---- Out = Out_Feature * sigmoid(Feature_New) + Feature.
        if lane_aligned:
            # HW % 128 == 0: three unmasked lane-aligned full-width column stores
            # (no (TB, 3*HW) concat temporary).
            for c in range(C):
                out_ref[:, c * HW:(c + 1) * HW] = of[c] * sa + f[c]
        else:
            out_ref[...] = jnp.concatenate(
                [of[c] * sa + f[c] for c in range(C)], axis=1)

    return kernel


def _round_up(x, m):
    return ((x + m - 1) // m) * m


def _vmem_limit(nbytes):
    # Above the 16/32 MiB scoped defaults, never above v7x's 64 MiB physical VMEM.
    return int(min(64 * 1024 * 1024, max(32 * 1024 * 1024, nbytes)))


def cbam_forward(x, params, out_feature_size, *, batch_tile=None):
    """x: (B, Feature_Num) float32. Returns (B, 3*out_feature_size) float32."""
    s = int(math.sqrt(out_feature_size))
    HW = s * s
    C = 3
    B, F = x.shape
    D = params["Wl"].shape[1]
    assert D == C * HW, "Linear output size must equal 3 * Out_Feature_size"
    OC = params["W1"].shape[0]
    lane_aligned = (HW % 128 == 0)

    # Batch tile: multiple of 16 (bf16 sublane pack for the MXU operand),
    # capped at 128 rows so large batches stream through the pipeline.
    if batch_tile is None:
        batch_tile = min(128, _round_up(B, 16))
    tb = _round_up(max(16, int(batch_tile)), 16)
    b_pad = _round_up(B, tb)
    nb = b_pad // tb

    x_pad = jnp.zeros((b_pad, F), jnp.float32).at[:B, :].set(x.astype(jnp.float32))
    x_bf = x_pad.astype(jnp.bfloat16)            # MXU-native operands; accum stays f32.
    wl_bf = params["Wl"].astype(jnp.bfloat16)
    bl = params["bl"].reshape(1, D).astype(jnp.float32)
    # TODO(synk): for tiny Feature_Num (F << 128) the Linear could instead be F
    # unrolled VPU broadcast-FMAs (the MXU pass is mostly streaming padding).

    # ---- pass 1: Linear + masked BatchNorm statistics (reduction over B tiles).
    cost1 = pl.CostEstimate(
        flops=int(2 * b_pad * F * D + 4 * b_pad * D),
        transcendentals=0,
        bytes_accessed=int(b_pad * F * 2 + F * D * 2 + D * 4
                           + b_pad * D * 4 + 2 * D * 4),
    )
    vmem1 = _vmem_limit(2 * (tb * F * 2 + tb * D * 4) + F * D * 2 + 8 * D * 4)
    lin, ssum, ssq = pl.pallas_call(
        _make_linstats_kernel(b_true=B, tb=tb),
        grid=(nb,),
        in_specs=[
            pl.BlockSpec((tb, F), lambda i: (i, 0)),       # x tile
            pl.BlockSpec((F, D), lambda i: (0, 0)),        # Wl (resident)
            pl.BlockSpec((1, D), lambda i: (0, 0)),        # bl
        ],
        out_specs=(
            pl.BlockSpec((tb, D), lambda i: (i, 0)),       # lin tile
            pl.BlockSpec((1, D), lambda i: (0, 0)),        # sum   (accumulator)
            pl.BlockSpec((1, D), lambda i: (0, 0)),        # sumsq (accumulator)
        ),
        out_shape=(
            jax.ShapeDtypeStruct((b_pad, D), jnp.float32),
            jax.ShapeDtypeStruct((1, D), jnp.float32),
            jax.ShapeDtypeStruct((1, D), jnp.float32),
        ),
        compiler_params=pltpu.CompilerParams(
            dimension_semantics=("arbitrary",),            # stats accumulate across tiles
            vmem_limit_bytes=vmem1),
        cost_estimate=cost1,
    )(x_bf, wl_bf, bl)

    # ---- pass 2 parameters.
    w1c = jnp.transpose(params["W1"][:, :, 1, 1]).astype(jnp.float32)    # (C, OC)
    w2m = jnp.transpose(params["W2"][:, :, 0, 0]).astype(jnp.float32)    # (OC, C)
    taps = jnp.concatenate([params["W3"][0, 0].reshape(-1),
                            params["W3"][0, 1].reshape(-1),
                            params["b3"].reshape(-1)]).astype(jnp.float32)   # (19,)
    idx = np.arange(HW, dtype=np.int64)
    hcrd = jnp.asarray((idx // s).astype(np.float32)).reshape(1, HW)
    wcrd = jnp.asarray((idx % s).astype(np.float32)).reshape(1, HW)
    gamma = params["gamma"].reshape(1, D).astype(jnp.float32)
    beta = params["beta"].reshape(1, D).astype(jnp.float32)
    b1 = params["b1"].reshape(1, OC).astype(jnp.float32)
    b2 = params["b2"].reshape(1, C).astype(jnp.float32)

    cost2 = pl.CostEstimate(
        flops=int(45 * b_pad * D + 4 * b_pad * C * OC),
        transcendentals=int(b_pad * (HW + C)),
        bytes_accessed=int(2 * b_pad * D * 4 + 6 * D * 4 + 2 * HW * 4 + 256),
    )
    vmem2 = _vmem_limit(2 * 2 * tb * D * 4 + 12 * tb * HW * 4 + 10 * D * 4)
    out = pl.pallas_call(
        _make_main_kernel(C=C, s=s, OC=OC, b_true=B, tb=tb,
                          lane_aligned=lane_aligned),
        grid=(nb,),
        in_specs=[
            pl.BlockSpec((tb, D), lambda i: (i, 0)),       # lin tile
            pl.BlockSpec((1, D), lambda i: (0, 0)),        # sum
            pl.BlockSpec((1, D), lambda i: (0, 0)),        # sumsq
            pl.BlockSpec((1, D), lambda i: (0, 0)),        # gamma
            pl.BlockSpec((1, D), lambda i: (0, 0)),        # beta
            pl.BlockSpec((C, OC), lambda i: (0, 0)),       # conv1 centre tap
            pl.BlockSpec((1, OC), lambda i: (0, 0)),       # b1
            pl.BlockSpec((OC, C), lambda i: (0, 0)),       # conv2 weight
            pl.BlockSpec((1, C), lambda i: (0, 0)),        # b2
            pl.BlockSpec((1, HW), lambda i: (0, 0)),       # row coordinates
            pl.BlockSpec((1, HW), lambda i: (0, 0)),       # col coordinates
            pl.BlockSpec((19,), lambda i: (0,),
                         memory_space=pltpu.MemorySpace.SMEM),   # conv3 taps + bias
        ],
        out_specs=pl.BlockSpec((tb, D), lambda i: (i, 0)),
        out_shape=jax.ShapeDtypeStruct((b_pad, D), jnp.float32),
        compiler_params=pltpu.CompilerParams(
            dimension_semantics=("parallel",),             # batch tiles independent
            vmem_limit_bytes=vmem2),
        cost_estimate=cost2,
    )(lin, ssum, ssq, gamma, beta, w1c, b1, w2m, b2, hcrd, wcrd, taps)
    return out[:B]


def cbam_reference(x, params, out_feature_size):
    """Pure-JAX reference mirroring the PyTorch forward (training-mode BN, NCHW).

    Uses the same bf16-rounded Linear operands as the kernel (MXU-native input
    precision) and f32-exact math elsewhere, so the comparison isolates kernel
    correctness rather than operand-rounding policy."""
    s = int(math.sqrt(out_feature_size))
    C = 3
    hp = lax.Precision.HIGHEST
    x_bf = x.astype(jnp.bfloat16).astype(jnp.float32)
    wl_bf = params["Wl"].astype(jnp.bfloat16).astype(jnp.float32)
    lin = jnp.dot(x_bf, wl_bf, precision=hp) + params["bl"]
    mean = lin.mean(axis=0)
    var = ((lin - mean) ** 2).mean(axis=0)
    feat = jax.nn.relu(params["gamma"] * (lin - mean) * lax.rsqrt(var + EPS)
                       + params["beta"])
    B = x.shape[0]
    F4 = feat.reshape(B, C, s, s)
    mp = F4.max(axis=(2, 3))
    ap = F4.mean(axis=(2, 3))

    def chatt(pool):
        y = jax.nn.relu(jnp.dot(pool, params["W1"][:, :, 1, 1].T, precision=hp)
                        + params["b1"])
        return jnp.dot(y, params["W2"][:, :, 0, 0].T, precision=hp) + params["b2"]

    ca = jax.nn.sigmoid(chatt(mp) + chatt(ap))
    OF = F4 * ca[:, :, None, None]
    cat = jnp.concatenate([OF.mean(axis=1, keepdims=True),
                           OF.max(axis=1, keepdims=True)], axis=1)
    fn = lax.conv_general_dilated(
        cat, params["W3"], window_strides=(1, 1), padding="SAME",
        dimension_numbers=("NCHW", "OIHW", "NCHW"), precision=hp) \
        + params["b3"][None, :, None, None]
    out = OF * jax.nn.sigmoid(fn) + F4
    return out.reshape(B, -1)


if __name__ == "__main__":
    B = 24                       # not a multiple of the 16-row tile -> exercises row masking
    FEATURE_NUM = 128
    OUT_FEATURE_SIZE_FWD = 256   # forward() arg -> 16x16 spatial, HW % 128 == 0 (aligned path)
    C = 3
    D = C * OUT_FEATURE_SIZE_FWD          # Linear output size (Out_Feature_size in __init__)
    IN_CH, OUT_CH = 3, 8                  # conv1/conv2 channel counts

    key = jax.random.PRNGKey(0)
    ks = jax.random.split(key, 9)
    params = {
        "Wl":    0.1 * jax.random.normal(ks[0], (FEATURE_NUM, D), jnp.float32),
        "bl":    0.1 * jax.random.normal(ks[1], (D,), jnp.float32),
        "gamma": jnp.ones((D,), jnp.float32),
        "beta":  jnp.zeros((D,), jnp.float32),
        "W1":    0.1 * jax.random.normal(ks[2], (OUT_CH, IN_CH, 3, 3), jnp.float32),
        "b1":    0.1 * jax.random.normal(ks[3], (OUT_CH,), jnp.float32),
        "W2":    0.1 * jax.random.normal(ks[4], (IN_CH, OUT_CH, 1, 1), jnp.float32),
        "b2":    0.1 * jax.random.normal(ks[5], (IN_CH,), jnp.float32),
        "W3":    0.1 * jax.random.normal(ks[6], (1, 2, 3, 3), jnp.float32),
        "b3":    0.1 * jax.random.normal(ks[7], (1,), jnp.float32),
    }
    x = jax.random.normal(ks[8], (B, FEATURE_NUM), jnp.float32)

    out = jax.block_until_ready(
        cbam_forward(x, params, OUT_FEATURE_SIZE_FWD, batch_tile=16))
    ref = cbam_reference(x, params, OUT_FEATURE_SIZE_FWD)
    np.testing.assert_allclose(np.asarray(out), np.asarray(ref), rtol=1e-3, atol=1e-3)
    print("KERNEL_OK")
</pallas_src>

<mosaic_0001>
module attributes {stable_mosaic.version = 11 : i64} {
  func.func @kernel(%arg0: i32, %arg1: memref<16x128xbf16, #tpu.memory_space<vmem>>, %arg2: memref<128x768xbf16, #tpu.memory_space<vmem>>, %arg3: memref<1x768xf32, #tpu.memory_space<vmem>>, %arg4: memref<16x768xf32, #tpu.memory_space<vmem>>, %arg5: memref<1x768xf32, #tpu.memory_space<vmem>>, %arg6: memref<1x768xf32, #tpu.memory_space<vmem>>) attributes {dimension_semantics = [#tpu.dimension_semantics<arbitrary>], iteration_bounds = array<i64: 2>, scalar_prefetch = 0 : i64, scratch_operands = 0 : i64, tpu.core_type = #tpu.core_type<tc>, window_params = [{transform_indices = @transform_0, window_bounds = array<i64: 16, 128>}, {pipeline_mode = #tpu.pipeline_mode<synchronous>, transform_indices = @transform_1, window_bounds = array<i64: 128, 768>}, {pipeline_mode = #tpu.pipeline_mode<synchronous>, transform_indices = @transform_2, window_bounds = array<i64: 1, 768>}, {transform_indices = @transform_3, window_bounds = array<i64: 16, 768>}, {pipeline_mode = #tpu.pipeline_mode<synchronous>, transform_indices = @transform_4, window_bounds = array<i64: 1, 768>}, {pipeline_mode = #tpu.pipeline_mode<synchronous>, transform_indices = @transform_5, window_bounds = array<i64: 1, 768>}]} {
    %c0 = arith.constant 0 : index
    %c0_0 = arith.constant 0 : index
    %0 = vector.load %arg1[%c0, %c0_0] : memref<16x128xbf16, #tpu.memory_space<vmem>>, vector<16x128xbf16>
    %c0_1 = arith.constant 0 : index
    %c0_2 = arith.constant 0 : index
    %1 = vector.load %arg2[%c0_1, %c0_2] : memref<128x768xbf16, #tpu.memory_space<vmem>>, vector<128x768xbf16>
    %cst = arith.constant dense<0.000000e+00> : vector<16x768xf32>
    %2 = tpu.matmul %0, %1, %cst {dimension_numbers = #tpu.dot_dimension_numbers<[1], [0], [0], [1], [0, 0, 1, 1], [], []>} : vector<16x128xbf16>, vector<128x768xbf16>, vector<16x768xf32> -> vector<16x768xf32>
    %c0_3 = arith.constant 0 : index
    %c0_4 = arith.constant 0 : index
    %3 = vector.load %arg3[%c0_3, %c0_4] : memref<1x768xf32, #tpu.memory_space<vmem>>, vector<1x768xf32>
    %4 = vector.broadcast %3 : vector<1x768xf32> to vector<16x768xf32>
    %5 = arith.addf %2, %4 : vector<16x768xf32>
    %c0_5 = arith.constant 0 : index
    %c0_6 = arith.constant 0 : index
    %6 = vector.load %arg4[%c0_5, %c0_6] : memref<16x768xf32, #tpu.memory_space<vmem>>, vector<16x768xf32>
    tpu.vector_store %arg4[%c0_5, %c0_6], %5 {strides = array<i32>} : memref<16x768xf32, #tpu.memory_space<vmem>>, vector<16x768xf32>,
    %c16_i32 = arith.constant 16 : i32
    %7 = arith.muli %arg0, %c16_i32 : i32
    %8 = tpu.iota {dimensions = array<i32: 0>} : vector<16x1xi32>
    %9 = vector.broadcast %7 : i32 to vector<16x1xi32>
    %10 = arith.addi %9, %8 : vector<16x1xi32>
    %c24_i32 = arith.constant 24 : i32
    %11 = vector.broadcast %c24_i32 : i32 to vector<16x1xi32>
    %12 = arith.cmpi slt, %10, %11 : vector<16x1xi32>
    %13 = arith.extui %12 : vector<16x1xi1> to vector<16x1xi32>
    %14 = arith.sitofp %13 : vector<16x1xi32> to vector<16x1xf32>
    %15 = vector.broadcast %14 : vector<16x1xf32> to vector<16x768xf32>
    %16 = arith.mulf %5, %15 : vector<16x768xf32>
    %c0_i32 = arith.constant 0 : i32
    %17 = arith.cmpi eq, %arg0, %c0_i32 : i32
    %18 = arith.extui %17 : i1 to i32
    %c0_i32_7 = arith.constant 0 : i32
    %19 = arith.cmpi ne, %18, %c0_i32_7 : i32
    scf.if %19 {
      %cst_18 = arith.constant 0.000000e+00 : f32
      %31 = vector.broadcast %cst_18 : f32 to vector<1x768xf32>
      %c0_19 = arith.constant 0 : index
      %c0_20 = arith.constant 0 : index
      %32 = vector.load %arg5[%c0_19, %c0_20] : memref<1x768xf32, #tpu.memory_space<vmem>>, vector<1x768xf32>
      tpu.vector_store %arg5[%c0_19, %c0_20], %31 {strides = array<i32>} : memref<1x768xf32, #tpu.memory_space<vmem>>, vector<1x768xf32>,
      %cst_21 = arith.constant 0.000000e+00 : f32
      %33 = vector.broadcast %cst_21 : f32 to vector<1x768xf32>
      %c0_22 = arith.constant 0 : index
      %c0_23 = arith.constant 0 : index
      %34 = vector.load %arg6[%c0_22, %c0_23] : memref<1x768xf32, #tpu.memory_space<vmem>>, vector<1x768xf32>
      tpu.vector_store %arg6[%c0_22, %c0_23], %33 {strides = array<i32>} : memref<1x768xf32, #tpu.memory_space<vmem>>, vector<1x768xf32>,
    } else {
    }
    %c0_8 = arith.constant 0 : index
    %c0_9 = arith.constant 0 : index
    %20 = vector.load %arg5[%c0_8, %c0_9] : memref<1x768xf32, #tpu.memory_space<vmem>>, vector<1x768xf32>
    %cst_10 = arith.constant dense<0.000000e+00> : vector<768xf32>
    %21 = vector.multi_reduction <add>, %16, %cst_10 [0] : vector<16x768xf32> to vector<768xf32>
    %22 = vector.shape_cast %21 : vector<768xf32> to vector<1x768xf32>
    %23 = arith.addf %20, %22 : vector<1x768xf32>
    %c0_11 = arith.constant 0 : index
    %c0_12 = arith.constant 0 : index
    %24 = vector.load %arg5[%c0_11, %c0_12] : memref<1x768xf32, #tpu.memory_space<vmem>>, vector<1x768xf32>
    tpu.vector_store %arg5[%c0_11, %c0_12], %23 {strides = array<i32>} : memref<1x768xf32, #tpu.memory_space<vmem>>, vector<1x768xf32>,
    %c0_13 = arith.constant 0 : index
    %c0_14 = arith.constant 0 : index
    %25 = vector.load %arg6[%c0_13, %c0_14] : memref<1x768xf32, #tpu.memory_space<vmem>>, vector<1x768xf32>
    %26 = arith.mulf %16, %5 : vector<16x768xf32>
    %cst_15 = arith.constant dense<0.000000e+00> : vector<768xf32>
    %27 = vector.multi_reduction <add>, %26, %cst_15 [0] : vector<16x768xf32> to vector<768xf32>
    %28 = vector.shape_cast %27 : vector<768xf32> to vector<1x768xf32>
    %29 = arith.addf %25, %28 : vector<1x768xf32>
    %c0_16 = arith.constant 0 : index
    %c0_17 = arith.constant 0 : index
    %30 = vector.load %arg6[%c0_16, %c0_17] : memref<1x768xf32, #tpu.memory_space<vmem>>, vector<1x768xf32>
    tpu.vector_store %arg6[%c0_16, %c0_17], %29 {strides = array<i32>} : memref<1x768xf32, #tpu.memory_space<vmem>>, vector<1x768xf32>,
    return
  }
  func.func @transform_0(%arg0: i32) -> (i32, i32) {
    %c0_i32 = arith.constant 0 : i32
    %c0_i32_0 = arith.constant 0 : i32
    return %arg0, %c0_i32 : i32, i32
  }
  func.func @transform_1(%arg0: i32) -> (i32, i32) {
    %c0_i32 = arith.constant 0 : i32
    %c0_i32_0 = arith.constant 0 : i32
    %c0_i32_1 = arith.constant 0 : i32
    return %c0_i32, %c0_i32_0 : i32, i32
  }
  func.func @transform_2(%arg0: i32) -> (i32, i32) {
    %c0_i32 = arith.constant 0 : i32
    %c0_i32_0 = arith.constant 0 : i32
    %c0_i32_1 = arith.constant 0 : i32
    return %c0_i32, %c0_i32_0 : i32, i32
  }
  func.func @transform_3(%arg0: i32) -> (i32, i32) {
    %c0_i32 = arith.constant 0 : i32
    %c0_i32_0 = arith.constant 0 : i32
    return %arg0, %c0_i32 : i32, i32
  }
  func.func @transform_4(%arg0: i32) -> (i32, i32) {
    %c0_i32 = arith.constant 0 : i32
    %c0_i32_0 = arith.constant 0 : i32
    %c0_i32_1 = arith.constant 0 : i32
    return %c0_i32, %c0_i32_0 : i32, i32
  }
  func.func @transform_5(%arg0: i32) -> (i32, i32) {
    %c0_i32 = arith.constant 0 : i32
    %c0_i32_0 = arith.constant 0 : i32
    %c0_i32_1 = arith.constant 0 : i32
    return %c0_i32, %c0_i32_0 : i32, i32
  }
}

</mosaic_0001>

<bundles_post_ra>
// kernel: tpu_custom_call.1
= control target key start
LH: loop header
LB: loop body
LE: loop exit
PB: predicated region body
PF: predicated region fallthrough
CT: control target
= control target key end

     0   :  { %11 = vsyncpa [#allocation3], 0  ;;  %s1992_s0 = inlined_call_operand.hbm [shape: bf16[32,128], index: 0, kind: input, shape index: {}]   ;;  %s1993_s1 = inlined_call_operand.hbm [shape: bf16[128,768], index: 1, kind: input, shape index: {}]   ;;  %s1994_s2 = inlined_call_operand.hbm [shape: f32[1,768], index: 2, kind: input, shape index: {}]   ;;  %s1995_s3 = inlined_call_operand.hbm [shape: f32[32,768], index: 3, kind: output, shape index: {0}]   ;;  %s1996_s4 = inlined_call_operand.hbm [shape: f32[1,768], index: 4, kind: output, shape index: {1}]   ;;  %s1997_s5 = inlined_call_operand.hbm [shape: f32[1,768], index: 5, kind: output, shape index: {2}]  }
   0x1   :  { %13 = vsyncpa [#allocation3 + $0x1], 0 }
   0x2   :  { %14 = vsyncpa [#allocation6], 0 }
   0x3   :  { %15 = vsyncpa [#allocation4], 0 }
   0x4   :  { %17 = vsyncpa [#allocation4 + $0x1], 0 }
   0x5   :  { %18 = vsyncpa [#allocation10], 0  ;;  %s1612_s18 = smov 0   ;;  %s1614_s19 = smov 0  }
   0x6   :  { %s1616_s20 = smov 0   ;;  %s1618_s21 = smov 0  }
   0x7 LB: > { %s1633_s22 = sadd.s32 4294967295, %s1564_s21   ;;  %s1123_s23 = sadd.s32 4294967294, %s1564_s21   ;;  %s1564_s21 = sphi %s1618_s21, %s2028_s21   ;;  %s1560_s20 = sphi %s1616_s20, %s2027_s20   ;;  %s1556_s19 = sphi %s1614_s19, %s2026_s19   ;;  %s1552_s18 = sphi %s1612_s18, %s2025_s18  }
   0x8   : > { %p44_p0 = scmp.ne.s32.totalorder %s1556_s19, %s1552_s18  ;;  %p1998_p1 = scmp.eq.s32.totalorder %s1633_s22, 0 }
   0x9   : > { %p116_p3 = scmp.eq.s32.totalorder %s1123_s23, 1  ;;  %p1124_p5 = scmp.ge.s32.totalorder %s1564_s21, 1 }
   0xa   : > { %p1642_p4 = por %p1998_p1, %p44_p0  ;;  %p165_p7 = scmp.lt.s32.totalorder %s1564_s21, 3 }
   0xb   : > { %p1647_p6 = por %p116_p3, %p44_p0  ;;  %s1566_s27 = smov [#allocation5]  }
   0xc   : > { %s2002_s24 = scalar_select %p1642_p4, 1, 0 }
   0xd   : > { %s2003_s25 = scalar_select %p1647_p6, 1, 0 }
   0xe   : > { %p1653_p9 = pnand %p1124_p5, %p165_p7  ;;  %s177_s28 = sshll.u32 %s1566_s27, 4  ;;  %s178_s28 = int_to_ptr.vmem [resolvable:$true] %s177_s28 }
   0xf   : > { %s1567_s30 = smov [#allocation7]   ;;  %s1375_s7 = scalar_lea.vmem %s178_s28, 6144 }
  0x10   : > { %s2004_s26 = scalar_select %p1653_p9, 1, 0 }
  0x11   : > { %p1220_p10 = pneg %p1653_p9  ;;  %s191_s6 = sshll.u32 %s1567_s30, 4  ;;  %s192_s6 = int_to_ptr.vmem [resolvable:$true] %s191_s6 }
  0x12   : > { %p1376_p0 = scmp.ne.s32.totalorder %s178_s28, %s1375_s7  ;;  %p1383_p7 = scmp.lt.s32.totalorder %s178_s28, %s178_s28 }
  0x13   : > { %p1662_p12 = pnand %p1220_p10, %p1998_p1  ;;  %p1384_p11 = scmp.lt.s32.totalorder %s1375_s7, %s1375_s7 }
  0x15   : > { %p1366_p13 = pneg %p1662_p12  ;;  %p1385_p8 = por %p1384_p11, %p1383_p7 }
  0x17   : > { %p1378_p3 = pnand %p1376_p0, %p1366_p13 }
  0x19   : > { %p1379_p5 = pneg %p1378_p3 }
  0x1b   : > { %p1386_p10 = pnand %p1385_p8, %p1379_p5 }
  0x1d   : > { %1389 = shalt.err (!%p1386_p10)
}
  0x1e   : > { %s1568_s8 = smov 384   ;;  %s1569_s9 = smov 24  }
  0x1f   : > { %1223 = dma.hbm_to_vmem [thread:$0]  (!%p1662_p12), %s1993_s1, 6144, %s178_s28, [#allocation6], %s1568_s8, %s1568_s8, %s1569_s9  }
  0x20   : > { %s1401_s12 = scalar_lea.vmem %s192_s6, 96  ;;  %p1409_p2 = scmp.lt.s32.totalorder %s192_s6, %s192_s6 }
  0x21   : > { %p1402_p1 = scmp.ne.s32.totalorder %s192_s6, %s1401_s12  ;;  %p1410_p6 = scmp.lt.s32.totalorder %s1401_s12, %s1401_s12 }
  0x23   : > { %p1404_p0 = pnand %p1402_p1, %p1366_p13  ;;  %p1411_p11 = por %p1410_p6, %p1409_p2 }
  0x25   : > { %p1405_p3 = pneg %p1404_p0 }
  0x27   : > { %p1412_p8 = pnand %p1411_p11, %p1405_p3 }
  0x29   : > { %1415 = shalt.err (!%p1412_p8)
}
  0x2a   : > { %1226 = dma.hbm_to_vmem [thread:$0]  (!%p1662_p12), %s1994_s2, 96, %s192_s6, [#allocation6]  }
  0x2b   : > { %s1685_s15 = sadd.s32 1, %s1564_s21   ;;  %s31_s16 = sadd.s32 1, %s1560_s20 }
  0x2c   : > { %s28_s17 = ssub.s32 %s1564_s21, %s1685_s15  ;;  %p38_p1 = scmp.ne.s32.totalorder %s1560_s20, %s1556_s19 }
  0x2d   : > { %p29_p2 = scmp.eq.s32.totalorder %s28_s17, 0  ;;  %p39_p6 = scmp.eq.s32.totalorder %s1564_s21, 0 }
  0x2e   : > { %p2006_p13 = scmp.eq.s32.totalorder %s1633_s22, 1  ;;  %p1237_p7 = scmp.lt.s32.totalorder %s1564_s21, 2 }
  0x2f   : > { %s1701_s27 = scalar_select %p29_p2, %s1560_s20, %s31_s16  }
  0x30   : > { %p1695_p5 = por %p2006_p13, %p38_p1  ;;  %p40_p10 = por %p39_p6, %p38_p1 }
  0x31   : > { %s202_s28 = sand.u32 1, %s1560_s20   ;;  %s1197_s30 = sshll.u32 %s1564_s21, 7 }
  0x32   : > { %s2007_s23 = scalar_select %p1695_p5, 1, 0 }
  0x33   : > { %s1128_s29 = sshll.u32 %s202_s28, 3  ;;  %s1708_s8 = scalar_lea.hbm %s1992_s0, %s1197_s30 }
  0x34   : > { %s206_s9 = scalar_lea.vmem [#allocation2], %s1128_s29  ;;  %p1712_p12 = pnand %p1237_p7, %p40_p10 }
  0x35   : > { %s213_s10 = sshll.u32 %s206_s9, 4  ;;  %s1716_s12 = scalar_lea.sflag [#allocation3], %s202_s28  ;;  %s1710_s10 = int_to_ptr.vmem [resolvable:$true] %s213_s10 }
  0x36   : > { %s1416_s13 = scalar_lea.hbm %s1708_s8, 128  ;;  %p1418_p3 = pneg %p1712_p12 }
  0x37   : > { %p1417_p0 = scmp.ne.s32.totalorder %s1708_s8, %s1416_s13  ;;  %s1421_s17 = scalar_lea.hbm %s1992_s0, 256 }
  0x38   : > { %p1422_p1 = scmp.lt.s32.totalorder %s1708_s8, %s1992_s0  ;;  %p1423_p2 = scmp.lt.s32.totalorder %s1421_s17, %s1416_s13 }
  0x39   : > { %p1419_p11 = pnand %p1418_p3, %p1417_p0 }
  0x3a   : > { %p1424_p6 = por %p1423_p2, %p1422_p1 }
  0x3b   : > { %p1420_p8 = pneg %p1419_p11 }
  0x3d   : > { %p1425_p13 = pnand %p1424_p6, %p1420_p8 }
  0x3f   : > { %1428 = shalt.err (!%p1425_p13)
}
  0x40   : > { %s1429_s28 = scalar_lea.vmem %s1710_s10, 128  ;;  %s1570_s6 = smov [#allocation2]  }
  0x41   : > { %p1430_p7 = scmp.ne.s32.totalorder %s1710_s10, %s1429_s28  ;;  %s1434_s7 = sshll.u32 %s1570_s6, 4  ;;  %s1435_s7 = int_to_ptr.vmem [resolvable:$false] %s1434_s7 }
  0x42   : > { %s1436_s9 = scalar_lea.vmem %s1435_s7, 256  ;;  %p1437_p11 = scmp.lt.s32.totalorder %s1710_s10, %s1435_s7 }
  0x43   : > { %p1432_p10 = pnand %p1430_p7, %p1418_p3  ;;  %p1438_p5 = scmp.lt.s32.totalorder %s1436_s9, %s1429_s28 }
  0x45   : > { %p1433_p0 = pneg %p1432_p10  ;;  %p1439_p4 = por %p1438_p5, %p1437_p11 }
  0x47   : > { %p1440_p9 = pnand %p1439_p4, %p1433_p0 }
  0x49   : > { %1443 = shalt.err (!%p1440_p9)
}
  0x4a   : > { %s1571_s13 = smov 64   ;;  %s1572_s14 = smov 4  }
  0x4b   : > { %1230 = dma.hbm_to_vmem [thread:$0]  (!%p1712_p12), %s1708_s8, 128, %s1710_s10, %s1716_s12, %s1571_s13, %s1571_s13, %s1572_s14  }
  0x4c   : > { %p2009_p3 = scmp.ne.s32.totalorder %s2004_s26, 0 }
  0x4d   : > { %s1740_s16 = sand.u32 (!%p2009_p3), 1, %s1556_s19   ;;  %p2010_p4 = scmp.ne.s32.totalorder (!%p2009_p3), %s2002_s24, 0 }
  0x4e   : > { %225 = sbr.rel (%p2009_p3) target bundleno = 424 (0x1a8), region = 32  ;;  %s1132_s17 = sshll.u32 (!%p2009_p3), %s1740_s16, 3 }
  0x4f   : > { %s228_s29 = scalar_lea.sflag (!%p2009_p3), [#allocation3], %s1740_s16  ;;  %s1744_s30 = scalar_lea.vmem (!%p2009_p3), [#allocation2], %s1132_s17 }
  0x53   : > { %1535 = dma.done.wait (%p2010_p4), %s228_s29, 128  }
  0x54   : > { %1537 = vsyncadd (%p2010_p4), %s228_s29, 4294967168  ;;  %p2011_p9 = scmp.eq.s32.totalorder %s1633_s22, 0 }
  0x56   : > { %1539 = dma.done.wait (%p2011_p9), [#allocation6], 6240   ;;  %p2012_p5 = pmov %p2011_p9 }
  0x57   : > { %v1573_v0 = vmov 0   ;;  %v1291_v1 = vld [vmem:[#allocation5 + $0x154] ss:$24 sps:$4 sm:$0xff]   ;;  %v1293_v2 = vld [vmem:[#allocation5 + $0x150] ss:$24 sps:$4 sm:$0xff]   ;;  %v321_v50 = vlaneseq  ;;  %s1184_s24 = sshll.u32 %s1633_s22, 4 }
  0x58   : > { %1541 = vsyncadd (%p2012_p5), [#allocation6], 4294961056  ;;  %629 = vmatprep.mubr.bf16.mxu0 %v1573_v0  ;;  %672 = vmatprep.mubr.bf16.mxu1 %v1573_v0  ;;  %v1294_v3 = vld [vmem:[#allocation5 + $0x124] ss:$24 sps:$4 sm:$0xff]   ;;  %v1296_v4 = vld [vmem:[#allocation5 + $0x120] ss:$24 sps:$4 sm:$0xff]   ;;  %v742_v52 = vstv %s1184_s24 }
  0x59   : > { %597 = vmatprep.subr.bf16.mxu0 %v1291_v1  ;;  %v1297_v5 = vld [vmem:[#allocation5 + $0xf4] ss:$24 sps:$4 sm:$0xff]   ;;  %v1299_v6 = vld [vmem:[#allocation5 + $0xf0] ss:$24 sps:$4 sm:$0xff]   ;;  %v1300_v7 = vld [vmem:[#allocation5 + $0xc4] ss:$24 sps:$4 sm:$0xff]  }
  0x5a   : > { %598 = vmatpush1.bf16.msra.mxu0 %v1293_v2  ;;  %v1312_v8 = vld [vmem:[#allocation5 + $0x15c] ss:$24 sps:$4 sm:$0xff]   ;;  %v1314_v9 = vld [vmem:[#allocation5 + $0x158] ss:$24 sps:$4 sm:$0xff]   ;;  %v1318_v12 = vld [vmem:[#allocation5 + $0x12c] ss:$24 sps:$4 sm:$0xff]  }
  0x5b   : > { %599 = vmatprep.subr.bf16.mxu0 %v1294_v3  ;;  %v1302_v10 = vld [vmem:[#allocation5 + $0xc0] ss:$24 sps:$4 sm:$0xff]   ;;  %v1303_v11 = vld [vmem:[#allocation5 + $0x94] ss:$24 sps:$4 sm:$0xff]   ;;  %640 = vmatprep.subr.bf16.mxu1 %v1312_v8  ;;  %v1305_v14 = vld [vmem:[#allocation5 + $0x90] ss:$24 sps:$4 sm:$0xff]  }
  0x5c   : > { %641 = vmatpush1.bf16.msra.mxu1 %v1314_v9  ;;  %v1320_v13 = vld [vmem:[#allocation5 + $0x128] ss:$24 sps:$4 sm:$0xff]   ;;  %v1306_v15 = vld [vmem:[#allocation5 + $0x64] ss:$24 sps:$4 sm:$0xff]   ;;  %v1327_v17 = vld [vmem:[#allocation5 + $0xf8] ss:$24 sps:$4 sm:$0xff]  }
  0x5d   : > { %642 = vmatprep.subr.bf16.mxu1 %v1318_v12  ;;  %v1325_v16 = vld [vmem:[#allocation5 + $0xfc] ss:$24 sps:$4 sm:$0xff]   ;;  %v1308_v18 = vld [vmem:[#allocation5 + $0x60] ss:$24 sps:$4 sm:$0xff]   ;;  %v1331_v19 = vld [vmem:[#allocation5 + $0xcc] ss:$24 sps:$4 sm:$0xff]  }
  0x5e   : > { %600 = vmatpush1.bf16.msra.mxu0 %v1296_v4  ;;  %v1309_v20 = vld [vmem:[#allocation5 + $0x34] ss:$24 sps:$4 sm:$0xff]   ;;  %v1333_v21 = vld [vmem:[#allocation5 + $0xc8] ss:$24 sps:$4 sm:$0xff]   ;;  %v1315_v24 = vld [vmem:[#allocation5 + $0x4] ss:$24 sps:$4 sm:$0xff]  }
  0x5f   : > { %601 = vmatprep.subr.bf16.mxu0 %v1297_v5  ;;  %v1337_v22 = vld [vmem:[#allocation5 + $0x9c] ss:$24 sps:$4 sm:$0xff]   ;;  %v1311_v23 = vld [vmem:[#allocation5 + $0x30] ss:$24 sps:$4 sm:$0xff]   ;;  %v1343_v26 = vld [vmem:[#allocation5 + $0x6c] ss:$24 sps:$4 sm:$0xff]  }
  0x60   : > { %643 = vmatpush1.bf16.msra.mxu1 %v1320_v13  ;;  %v1339_v25 = vld [vmem:[#allocation5 + $0x98] ss:$24 sps:$4 sm:$0xff]   ;;  %v1324_v29 = vld [vmem:[#allocation5 + $0x164] ss:$24 sps:$4 sm:$0xff]   ;;  %v1345_v30 = vld [vmem:[#allocation5 + $0x68] ss:$24 sps:$4 sm:$0xff]  }
  0x61   : > { %644 = vmatprep.subr.bf16.mxu1 %v1325_v16  ;;  %v1317_v27 = vld [vmem:[#allocation5] ss:$24 sps:$4 sm:$0xff]   ;;  %v1349_v31 = vld [vmem:[#allocation5 + $0x3c] ss:$24 sps:$4 sm:$0xff]   ;;  %v1355_v35 = vld [vmem:[#allocation5 + $0xc] ss:$24 sps:$4 sm:$0xff]  }
  0x62   : > { %602 = vmatpush1.bf16.msra.mxu0 %v1299_v6  ;;  %v1321_v28 = vld [vmem:[%s1744_s30] sm:$0xff]   ;;  %v1357_v38 = vld [vmem:[#allocation5 + $0x8] ss:$24 sps:$4 sm:$0xff]   ;;  %v1760_v51 = vshrl.u32 %v321_v50, 7  ;;  %s1198_s26 = smul.u32 96, %s1740_s16  ;;  %v1574_v62 = vmov 0.0  }
  0x63   : > { %603 = vmatprep.subr.bf16.mxu0 %v1300_v7  ;;  %v1322_v32 = vld [vmem:[#allocation5 + $0x160] ss:$24 sps:$4 sm:$0xff]   ;;  %v1330_v33 = vld [vmem:[#allocation5 + $0x134] ss:$24 sps:$4 sm:$0xff]   ;;  %v1328_v36 = vld [vmem:[#allocation5 + $0x130] ss:$24 sps:$4 sm:$0xff]  }
  0x64   : > { %645 = vmatpush1.bf16.msra.mxu1 %v1327_v17  ;;  %v1351_v34 = vld [vmem:[#allocation5 + $0x38] ss:$24 sps:$4 sm:$0xff]   ;;  %v1336_v37 = vld [vmem:[#allocation5 + $0x104] ss:$24 sps:$4 sm:$0xff]   ;;  %v1342_v40 = vld [vmem:[#allocation5 + $0xd4] ss:$24 sps:$4 sm:$0xff]   ;;  %v743_v54 = vadd.s32 %v742_v52, %v1760_v51 }
  0x65   : > { %646 = vmatprep.subr.bf16.mxu1 %v1331_v19  ;;  %v1334_v39 = vld [vmem:[#allocation5 + $0x100] ss:$24 sps:$4 sm:$0xff]   ;;  %v1340_v41 = vld [vmem:[#allocation5 + $0xd0] ss:$24 sps:$4 sm:$0xff]   ;;  %v1348_v42 = vld [vmem:[#allocation5 + $0xa4] ss:$24 sps:$4 sm:$0xff]  }
  0x66   : > { %604 = vmatpush1.bf16.msra.mxu0 %v1302_v10  ;;  %v1346_v43 = vld [vmem:[#allocation5 + $0xa0] ss:$24 sps:$4 sm:$0xff]   ;;  %v1354_v44 = vld [vmem:[#allocation5 + $0x74] ss:$24 sps:$4 sm:$0xff]   ;;  %v1352_v45 = vld [vmem:[#allocation5 + $0x70] ss:$24 sps:$4 sm:$0xff]  }
  0x67   : > { %605 = vmatprep.subr.bf16.mxu0 %v1303_v11  ;;  %v1360_v46 = vld [vmem:[#allocation5 + $0x44] ss:$24 sps:$4 sm:$0xff]   ;;  %v1358_v47 = vld [vmem:[#allocation5 + $0x40] ss:$24 sps:$4 sm:$0xff]   ;;  %v1363_v48 = vld [vmem:[#allocation5 + $0x14] ss:$24 sps:$4 sm:$0xff]  }
  0x68   : > { %647 = vmatpush1.bf16.msra.mxu1 %v1333_v21  ;;  %v1361_v49 = vld [vmem:[#allocation5 + $0x10] ss:$24 sps:$4 sm:$0xff]   ;;  %v323_v53 = vsub.s32 0, %v1760_v51  ;;  %v741_v55 = vadd.s32 8, %v1760_v51  ;;  %v319_v56 = vld [vmem:[#allocation7] sm:$0x3f] }
  0x69   : > { %648 = vmatprep.subr.bf16.mxu1 %v1337_v22  ;;  %v327_v57 = vsub.s32 1, %v1760_v51  ;;  %vm745_vm0 = vcmp.lt.s32.totalorder %v743_v54, 24  ;;  %s1769_s8 = scalar_lea.vmem [#allocation8], %s1198_s26  ;;  %v331_v4 = vsub.s32 2, %v1760_v51  ;;  %v335_v9 = vsub.s32 3, %v1760_v51  ;;  %p2013_p12 = scmp.ne.s32.totalorder %s1633_s22, 0 }
  0x6a   : > { %606 = vmatpush1.bf16.msra.mxu0 %v1305_v14  ;;  %v324_v58 = vrot.slane %v319_v56, %v323_v53  ;;  %v744_v59 = vadd.s32 %v742_v52, %v741_v55  ;;  %v1185_v63 = vsel %vm745_vm0, 1.0, %v1574_v62 }
  0x6b   : > { %607 = vmatprep.subr.bf16.mxu0 %v1306_v15  ;;  %v328_v60 = vrot.slane %v319_v56, %v327_v57  ;;  %v332_v13 = vrot.slane %v319_v56, %v331_v4  ;;  %v336_v15 = vrot.slane %v319_v56, %v335_v9 }
  0x6c   : > { %649 = vmatpush1.bf16.msra.mxu1 %v1339_v25  ;;  %vm746_vm1 = vcmp.lt.s32.totalorder %v744_v59, 24 }
  0x6d   : > { %650 = vmatprep.subr.bf16.mxu1 %v1343_v26  ;;  %v1186_v6 = vsel %vm746_vm1, 1.0, %v1574_v62 }
  0x6e   : > { %608 = vmatpush1.bf16.msra.mxu0 %v1308_v18 }
  0x6f   : > { %609 = vmatprep.subr.bf16.mxu0 %v1309_v20 }
  0x70   : > { %651 = vmatpush1.bf16.msra.mxu1 %v1345_v30 }
  0x71   : > { %652 = vmatprep.subr.bf16.mxu1 %v1349_v31 }
  0x72   : > { %610 = vmatpush1.bf16.msra.mxu0 %v1311_v23 }
  0x73   : > { %611 = vmatprep.subr.bf16.mxu0 %v1315_v24 }
  0x74   : > { %653 = vmatpush1.bf16.msra.mxu1 %v1351_v34 }
  0x75   : > { %654 = vmatprep.subr.bf16.mxu1 %v1355_v35 }
  0x76   : > { %612 = vmatpush1.bf16.msra.mxu0 %v1317_v27 }
  0x77   : > { %683 = vmatprep.subr.bf16.mxu0 %v1324_v29  ;;  %v343_v29 = vsub.s32 5, %v1760_v51 }
  0x78   : > { %655 = vmatpush1.bf16.msra.mxu1 %v1357_v38 }
  0x79   : > { %630 = vmatmul.mubr.bf16.vlgmr.msra.gmra.mxu0 %v1321_v28  ;;  %v344_v31 = vrot.slane %v319_v56, %v343_v29 }
  0x7a   : > { %684 = vmatpush1.bf16.msra.mxu0 %v1322_v32  ;;  %715 = vmatprep.mubr.bf16.mxu0 %v1573_v0 }
  0x7b   : > { %685 = vmatprep.subr.bf16.mxu0 %v1330_v33  ;;  %673 = vmatmul.mubr.bf16.vlgmr.msra.gmra.mxu1 %v1321_v28 }
  0x7e   : > { %686 = vmatpush1.bf16.msra.mxu0 %v1328_v36 }
  0x7f   : > { %687 = vmatprep.subr.bf16.mxu0 %v1336_v37 }
  0x82   : > { %688 = vmatpush1.bf16.msra.mxu0 %v1334_v39 }
  0x83   : > { %689 = vmatprep.subr.bf16.mxu0 %v1342_v40 }
  0x86   : > { %690 = vmatpush1.bf16.msra.mxu0 %v1340_v41 }
  0x87   : > { %691 = vmatprep.subr.bf16.mxu0 %v1348_v42 }
  0x8a   : > { %692 = vmatpush1.bf16.msra.mxu0 %v1346_v43 }
  0x8b   : > { %693 = vmatprep.subr.bf16.mxu0 %v1354_v44 }
  0x8e   : > { %694 = vmatpush1.bf16.msra.mxu0 %v1352_v45 }
  0x8f   : > { %695 = vmatprep.subr.bf16.mxu0 %v1360_v46 }
  0x92   : > { %696 = vmatpush1.bf16.msra.mxu0 %v1358_v47 }
  0x93   : > { %697 = vmatprep.subr.bf16.mxu0 %v1363_v48 }
  0x96   : > { %698 = vmatpush1.bf16.msra.mxu0 %v1361_v49 }
  0x99   : > { %716 = vmatmul.mubr.bf16.vlgmr.msra.gmra.mxu0 %v1321_v28  ;;  %v339_v28 = vsub.s32 4, %v1760_v51 }
  0x9b   : > { %v340_v30 = vrot.slane %v319_v56, %v339_v28 }
 0x139   : > { %v631_v61 = vpop.f32.mrf.mxu0 }
 0x13a   : > { %v1767_v0 = vadd.f32 %v631_v61, %v324_v58 }
 0x13b   : > { %v633_v1 = vpop.f32.mrf.mxu0  ;;  %v674_v16 = vpop.f32.mrf.mxu1 }
 0x13c   : > { %726 = vst [vmem:[%s1769_s8] sm:$0xff] %v1767_v0  ;;  %v1774_v2 = vmul.f32 %v1185_v63, %v1767_v0  ;;  %v1776_v3 = vadd.f32 %v633_v1, %v328_v60  ;;  %v1799_v17 = vadd.f32 %v674_v16, %v332_v13 }
 0x13d   : > { %v635_v5 = vpop.f32.mrf.mxu0  ;;  %v676_v18 = vpop.f32.mrf.mxu1 }
 0x13e   : > { %727 = vst [vmem:[%s1769_s8 + $0x8] sm:$0xff] %v1776_v3  ;;  %v1782_v7 = vmul.f32 %v1185_v63, %v1776_v3  ;;  %v1784_v8 = vadd.f32 %v635_v5, %v324_v58  ;;  %728 = vst [vmem:[%s1769_s8 + $0x10] sm:$0xff] %v1799_v17  ;;  %v1804_v19 = vmul.f32 %v1185_v63, %v1799_v17 }
 0x13f   : > { %v637_v10 = vpop.f32.mrf.mxu0  ;;  %v1806_v20 = vadd.f32 %v676_v18, %v336_v15  ;;  %v678_v21 = vpop.f32.mrf.mxu1 }
 0x140   : > { %732 = vst [vmem:[%s1769_s8 + $0x30] sm:$0xff] %v1784_v8  ;;  %v1790_v11 = vmul.f32 %v1186_v6, %v1784_v8  ;;  %v1792_v12 = vadd.f32 %v637_v10, %v328_v60  ;;  %v1813_v23 = vadd.f32 %v678_v21, %v332_v13 }
 0x141   : > { %729 = vst [vmem:[%s1769_s8 + $0x18] sm:$0xff] %v1806_v20  ;;  %v1811_v22 = vmul.f32 %v1185_v63, %v1806_v20  ;;  %v680_v24 = vpop.f32.mrf.mxu1 }
 0x142   : > { %733 = vst [vmem:[%s1769_s8 + $0x38] sm:$0xff] %v1792_v12  ;;  %v1797_v14 = vmul.f32 %v1186_v6, %v1792_v12  ;;  %734 = vst [vmem:[%s1769_s8 + $0x40] sm:$0xff] %v1813_v23  ;;  %v1818_v25 = vmul.f32 %v1186_v6, %v1813_v23  ;;  %v1820_v26 = vadd.f32 %v680_v24, %v336_v15 }
 0x144   : > { %735 = vst [vmem:[%s1769_s8 + $0x48] sm:$0xff] %v1820_v26  ;;  %v1825_v27 = vmul.f32 %v1186_v6, %v1820_v26 }
 0x159   : > { %v717_v32 = vpop.f32.mrf.mxu0 }
 0x15a   : > { %v1829_v33 = vadd.f32 %v717_v32, %v340_v30 }
 0x15b   : > { %v719_v34 = vpop.f32.mrf.mxu0 }
 0x15c   : > { %730 = vst [vmem:[%s1769_s8 + $0x20] sm:$0xff] %v1829_v33  ;;  %v1834_v35 = vmul.f32 %v1185_v63, %v1829_v33  ;;  %v1836_v36 = vadd.f32 %v719_v34, %v344_v31 }
 0x15d   : > { %v721_v37 = vpop.f32.mrf.mxu0 }
 0x15e   : > { %731 = vst [vmem:[%s1769_s8 + $0x28] sm:$0xff] %v1836_v36  ;;  %v1841_v38 = vmul.f32 %v1185_v63, %v1836_v36  ;;  %v1843_v39 = vadd.f32 %v721_v37, %v340_v30  ;;  %766 = sbr.rel (%p2013_p12) target bundleno = 357 (0x165), region = 48 }
 0x15f   : > { %v723_v40 = vpop.f32.mrf.mxu0 }
 0x160   : > { %736 = vst [vmem:[%s1769_s8 + $0x50] sm:$0xff] %v1843_v39  ;;  %v1848_v41 = vmul.f32 %v1186_v6, %v1843_v39  ;;  %v1850_v42 = vadd.f32 %v723_v40, %v344_v31 }
 0x162   : > { %737 = vst [vmem:[%s1769_s8 + $0x58] sm:$0xff] %v1850_v42  ;;  %v1855_v43 = vmul.f32 %v1186_v6, %v1850_v42 }
 0x163   : > { %vm769_vm2 = vcmp.lt.s32.totalorder %v321_v50, 768  ;;  %v1575_v44 = vmov 0.0  }
 0x164   : > { %771 = vst.msk [vmem:[#allocation9] sm:$0x3f] %vm769_vm2, %v1575_v44  ;;  %772 = vst.msk [vmem:[#allocation11] sm:$0x3f] %vm769_vm2, %v1575_v44 }
 0x165 PF: > { %v774_v45 = vadd.f32 %v1790_v11, %v1774_v2  ;;  %v781_v46 = vadd.f32 %v1797_v14, %v1782_v7  ;;  %v788_v47 = vadd.f32 %v1818_v25, %v1804_v19  ;;  %v795_v48 = vadd.f32 %v1825_v27, %v1811_v22  ;;  %s1199_s10 = smul.u32 1536, %s1633_s22  ;;  %s988_s11 = sshll.u32 %s1769_s8, 4  ;;  %s1883_s11 = int_to_ptr.vmem [resolvable:$true] %s988_s11 }
 0x166   : > { %v802_v49 = vadd.f32 %v1848_v41, %v1834_v35  ;;  %v809_v52 = vadd.f32 %v1855_v43, %v1841_v38  ;;  %v1576_v59 = vmov 1966171168   ;;  %v1875_v61 = vmul.f32 %v1774_v2, %v1767_v0  ;;  %s974_s7 = scalar_lea.sflag [#allocation4], %s1740_s16  ;;  %s1444_s9 = scalar_lea.vmem %s1883_s11, 1536 }
 0x167   : > { %v775_v53 = vrot.slane %v774_v45, 4  ;;  %v782_v54 = vrot.slane %v781_v46, 4  ;;  %v789_v55 = vrot.slane %v788_v47, 4  ;;  %v796_v56 = vrot.slane %v795_v48, 4  ;;  %s1881_s6 = scalar_lea.hbm %s1995_s3, %s1199_s10  ;;  %p1445_p8 = scmp.ne.s32.totalorder %s1883_s11, %s1444_s9 }
 0x168   : > { %v803_v57 = vrot.slane %v802_v49, 4  ;;  %v810_v58 = vrot.slane %v809_v52, 4  ;;  %v826_v60 = vunpack.c.l.s4 %v1576_v59  ;;  %v1887_v2 = vmul.f32 %v1782_v7, %v1776_v3  ;;  %p2014_p1 = scmp.ne.s32.totalorder %s2007_s23, 0  ;;  %s1577_s13 = smov [#allocation8]  }
 0x169   : > { %v776_v62 = vadd.f32 %v775_v53, %v774_v45  ;;  %v783_v63 = vadd.f32 %v782_v54, %v781_v46  ;;  %v790_v1 = vadd.f32 %v789_v55, %v788_v47  ;;  %v797_v4 = vadd.f32 %v796_v56, %v795_v48  ;;  %s1448_s14 = sshll.u32 %s1577_s13, 4  ;;  %s1449_s14 = int_to_ptr.vmem [resolvable:$false] %s1448_s14 }
 0x16a   : > { %v804_v5 = vadd.f32 %v803_v57, %v802_v49  ;;  %v811_v6 = vadd.f32 %v810_v58, %v809_v52  ;;  %v827_v0 = vunpack.c.0.s8 %v826_v60  ;;  %p1446_p2 = pnand %p1445_p8, %p2014_p1  ;;  %s1450_s17 = scalar_lea.vmem %s1449_s14, 3072 }
 0x16b   : > { %v777_v9 = vrot.slane %v776_v62, 2  ;;  %v784_v10 = vrot.slane %v783_v63, 2  ;;  %v791_v13 = vrot.slane %v790_v1, 2  ;;  %v798_v15 = vrot.slane %v797_v4, 2  ;;  %p1451_p13 = scmp.lt.s32.totalorder %s1883_s11, %s1449_s14  ;;  %p1452_p7 = scmp.lt.s32.totalorder %s1450_s17, %s1444_s9 }
 0x16c   : > { %p1447_p6 = pneg %p1446_p2 }
 0x16d   : > { %p1453_p10 = por %p1452_p7, %p1451_p13 }
 0x16f   : > { %p1454_p0 = pnand %p1453_p10, %p1447_p6 }
 0x171   : > { %1457 = shalt.err (!%p1454_p0)
}
 0x172   : > { %s1458_s29 = scalar_lea.hbm %s1881_s6, 1536  ;;  %s1462_s26 = scalar_lea.hbm %s1995_s3, 3072 }
 0x173   : > { %p1459_p11 = scmp.ne.s32.totalorder %s1881_s6, %s1458_s29  ;;  %p1463_p9 = scmp.lt.s32.totalorder %s1881_s6, %s1995_s3 }
 0x174   : > { %p1464_p5 = scmp.lt.s32.totalorder %s1462_s26, %s1458_s29 }
 0x175   : > { %p1460_p3 = pnand %p1459_p11, %p2014_p1 }
 0x176   : > { %p1465_p12 = por %p1464_p5, %p1463_p9 }
 0x177   : > { %p1461_p4 = pneg %p1460_p3 }
 0x179   : > { %p1466_p8 = pnand %p1465_p12, %p1461_p4 }
 0x17b   : > { %1469 = shalt.err (!%p1466_p8)
}
 0x17c   : > { %s1578_s12 = smov 768   ;;  %s1579_s28 = smov 48   ;;  %v805_v3 = vrot.slane %v804_v5, 2  ;;  %v812_v7 = vrot.slane %v811_v6, 2  ;;  %v1913_v16 = vsub.s32 %v827_v0, %v1760_v51  ;;  %v872_v18 = vmul.f32 %v1804_v19, %v1799_v17 }
 0x17d   : > { %1210 = dma.vmem_to_hbm [thread:$0]  (%p2014_p1), %s1883_s11, 1536, %s1881_s6, %s974_s7, %s1578_s12, %s1578_s12, %s1579_s28   ;;  %v778_v21 = vadd.f32 %v777_v9, %v776_v62  ;;  %v785_v24 = vadd.f32 %v784_v10, %v783_v63  ;;  %v792_v28 = vadd.f32 %v791_v13, %v790_v1  ;;  %v799_v29 = vadd.f32 %v798_v15, %v797_v4 }
 0x17e   : > { %v806_v30 = vadd.f32 %v805_v3, %v804_v5  ;;  %v813_v31 = vadd.f32 %v812_v7, %v811_v6  ;;  %v873_v32 = vmul.f32 %v1811_v22, %v1806_v20  ;;  %v874_v34 = vmul.f32 %v1834_v35, %v1829_v33  ;;  %v773_v6 = vld [vmem:[#allocation9] sm:$0x3f]  ;;  %s1580_s23 = smov [#allocation9]   ;;  %p2017_p2 = scmp.eq.s32.totalorder %s1633_s22, 1 }
 0x17f   : > { %v779_v37 = vrot.slane %v778_v21, 1  ;;  %v786_v40 = vrot.slane %v785_v24, 1  ;;  %v793_v44 = vrot.slane %v792_v28, 1  ;;  %v800_v51 = vrot.slane %v799_v29, 1  ;;  %s1002_s16 = sshll.u32 %s1580_s23, 4  ;;  %s1003_s16 = int_to_ptr.vmem [resolvable:$true] %s1002_s16 }
 0x180   : > { %v807_v45 = vrot.slane %v806_v30, 1  ;;  %v814_v46 = vrot.slane %v813_v31, 1  ;;  %v875_v17 = vmul.f32 %v1841_v38, %v1836_v36  ;;  %v876_v19 = vmul.f32 %v1790_v11, %v1784_v8  ;;  %s1470_s11 = scalar_lea.vmem %s1003_s16, 96  ;;  %p1477_p7 = scmp.lt.s32.totalorder %s1003_s16, %s1003_s16 }
 0x181   : > { %v780_v47 = vadd.f32 %v779_v37, %v778_v21  ;;  %v787_v48 = vadd.f32 %v786_v40, %v785_v24  ;;  %v794_v49 = vadd.f32 %v793_v44, %v792_v28  ;;  %v801_v52 = vadd.f32 %v800_v51, %v799_v29  ;;  %p1471_p1 = scmp.ne.s32.totalorder %s1003_s16, %s1470_s11  ;;  %p1478_p10 = scmp.lt.s32.totalorder %s1470_s11, %s1470_s11 }
 0x182   : > { %v808_v20 = vadd.f32 %v807_v45, %v806_v30  ;;  %v815_v22 = vadd.f32 %v814_v46, %v813_v31  ;;  %v877_v33 = vmul.f32 %v1797_v14, %v1792_v12  ;;  %v878_v35 = vmul.f32 %v1818_v25, %v1813_v23 }
 0x183   : > { %v822_v53 = vcombine.low %v780_v47, %v787_v48  ;;  %v823_v54 = vcombine.low %v794_v49, %v801_v52  ;;  %v879_v36 = vmul.f32 %v1825_v27, %v1820_v26  ;;  %v880_v8 = vmul.f32 %v1848_v41, %v1843_v39  ;;  %p1472_p6 = pnand %p1471_p1, %p2017_p2  ;;  %p1479_p0 = por %p1478_p10, %p1477_p7 }
 0x184   : > { %v824_v11 = vcombine.low %v808_v20, %v815_v22  ;;  %v881_v38 = vmul.f32 %v1855_v43, %v1850_v42  ;;  %v882_v55 = vadd.f32 %v876_v19, %v1875_v61  ;;  %v889_v56 = vadd.f32 %v877_v33, %v1887_v2 }
 0x185   : > { %v831_v12 = vrot.slane %v822_v53, %v1913_v16  ;;  %v838_v14 = vrot.slane %v823_v54, %v1913_v16  ;;  %v896_v23 = vadd.f32 %v878_v35, %v872_v18  ;;  %v903_v25 = vadd.f32 %v879_v36, %v873_v32  ;;  %p1473_p13 = pneg %p1472_p6 }
 0x186   : > { %v845_v57 = vrot.slane %v824_v11, %v1913_v16  ;;  %v883_v26 = vrot.slane %v882_v55, 4  ;;  %v890_v27 = vrot.slane %v889_v56, 4  ;;  %v910_v58 = vadd.f32 %v880_v8, %v874_v34 }
 0x187   : > { %v846_v39 = vcombine.low %v831_v12, %v838_v14  ;;  %v897_v41 = vrot.slane %v896_v23, 4  ;;  %v904_v59 = vrot.slane %v903_v25, 4  ;;  %v917_v60 = vadd.f32 %v881_v38, %v875_v17  ;;  %p1480_p11 = pnand %p1479_p0, %p1473_p13 }
 0x188   : > { %v860_v42 = vrot.slane %v845_v57, %v1913_v16  ;;  %v884_v43 = vadd.f32 %v883_v26, %v882_v55  ;;  %v891_v61 = vadd.f32 %v890_v27, %v889_v56  ;;  %v911_v62 = vrot.slane %v910_v58, 4 }
 0x189   : > { %v853_v63 = vrot.slane %v846_v39, %v1913_v16  ;;  %v898_v1 = vadd.f32 %v897_v41, %v896_v23  ;;  %v905_v4 = vadd.f32 %v904_v59, %v903_v25  ;;  %v918_v5 = vrot.slane %v917_v60, 4 }
 0x18a   : > { %v885_v0 = vrot.slane %v884_v43, 2  ;;  %v892_v2 = vrot.slane %v891_v61, 2  ;;  %v912_v9 = vadd.f32 %v911_v62, %v910_v58  ;;  %vm1943_vm3 = vcmp.lt.s32.totalorder %v321_v50, 768 }
 0x18b   : > { %v861_v10 = vcombine.low %v853_v63, %v860_v42  ;;  %v899_v13 = vrot.slane %v898_v1, 2  ;;  %v906_v15 = vrot.slane %v905_v4, 2  ;;  %v919_v3 = vadd.f32 %v918_v5, %v917_v60 }
 0x18c   : > { %v886_v18 = vadd.f32 %v885_v0, %v884_v43  ;;  %v893_v21 = vadd.f32 %v892_v2, %v891_v61  ;;  %v913_v24 = vrot.slane %v912_v9, 2 }
 0x18d   : > { %v863_v28 = vadd.f32 %v861_v10, %v773_v6  ;;  %v900_v29 = vadd.f32 %v899_v13, %v898_v1  ;;  %v907_v30 = vadd.f32 %v906_v15, %v905_v4  ;;  %v920_v31 = vrot.slane %v919_v3, 2 }
 0x18e   : > { %v887_v32 = vrot.slane %v886_v18, 1  ;;  %v894_v34 = vrot.slane %v893_v21, 1  ;;  %v914_v37 = vadd.f32 %v913_v24, %v912_v9 }
 0x18f   : > { %868 = vst.msk [vmem:[#allocation9] sm:$0x3f] %vm1943_vm3, %v863_v28  ;;  %v901_v40 = vrot.slane %v900_v29, 1  ;;  %v908_v50 = vrot.slane %v907_v30, 1  ;;  %v921_v44 = vadd.f32 %v920_v31, %v919_v3 }
 0x190   : > { %v888_v51 = vadd.f32 %v887_v32, %v886_v18  ;;  %v895_v45 = vadd.f32 %v894_v34, %v893_v21  ;;  %v915_v46 = vrot.slane %v914_v37, 1 }
 0x191   : > { %1483 = shalt.err (!%p1480_p11)
}
 0x192   : > { %p2018_p3 = pmov %p2017_p2  ;;  %v902_v17 = vadd.f32 %v901_v40, %v900_v29  ;;  %v909_v19 = vadd.f32 %v908_v50, %v907_v30  ;;  %v922_v47 = vrot.slane %v921_v44, 1  ;;  %v916_v48 = vadd.f32 %v915_v46, %v914_v37  ;;  %v869_v11 = vld [vmem:[#allocation11] sm:$0x3f]  ;;  %s1581_s9 = smov [#allocation11]  }
 0x193   : > { %v930_v49 = vcombine.low %v888_v51, %v895_v45  ;;  %s1013_s13 = sshll.u32 %s1581_s9, 4  ;;  %p2019_p9 = pmov %p2017_p2  ;;  %s1014_s13 = int_to_ptr.vmem [resolvable:$true] %s1013_s13 }
 0x194   : > { %1212 = dma.vmem_to_hbm [thread:$0]  (%p2018_p3), %s1003_s16, 96, %s1996_s4, [#allocation10]   ;;  %v923_v52 = vadd.f32 %v922_v47, %v921_v44  ;;  %v931_v20 = vcombine.low %v902_v17, %v909_v19 }
 0x195   : > { %v939_v22 = vrot.slane %v930_v49, %v1913_v16  ;;  %s1494_s14 = scalar_lea.vmem %s1014_s13, 96  ;;  %p1501_p8 = scmp.lt.s32.totalorder %s1014_s13, %s1014_s13 }
 0x196   : > { %v932_v33 = vcombine.low %v916_v48, %v923_v52  ;;  %v946_v35 = vrot.slane %v931_v20, %v1913_v16  ;;  %p1495_p4 = scmp.ne.s32.totalorder %s1014_s13, %s1494_s14  ;;  %p1502_p1 = scmp.lt.s32.totalorder %s1494_s14, %s1494_s14 }
 0x198   : > { %v953_v53 = vrot.slane %v932_v33, %v1913_v16  ;;  %v954_v54 = vcombine.low %v939_v22, %v946_v35  ;;  %p1496_p5 = pnand %p1495_p4, %p2019_p9  ;;  %p1503_p2 = por %p1502_p1, %p1501_p8 }
 0x19a   : > { %v961_v36 = vrot.slane %v954_v54, %v1913_v16  ;;  %v968_v8 = vrot.slane %v953_v53, %v1913_v16  ;;  %p1497_p12 = pneg %p1496_p5 }
 0x19c   : > { %v969_v38 = vcombine.low %v961_v36, %v968_v8  ;;  %p1504_p6 = pnand %p1503_p2, %p1497_p12 }
 0x19e   : > { %v971_v55 = vadd.f32 %v969_v38, %v869_v11 }
 0x1a0   : > { %972 = vst.msk [vmem:[#allocation11] sm:$0x3f] %vm1943_vm3, %v971_v55 }
 0x1a1   : > { %1507 = shalt.err (!%p1504_p6)
}
 0x1a2   : > { %p2020_p13 = pmov %p2018_p3  ;;  %p2021_p7 = pmov %p2018_p3 }
 0x1a4   : > { %1214 = dma.vmem_to_hbm [thread:$0]  (%p2020_p13), %s1014_s13, 96, %s1997_s5, [#allocation10]  }
 0x1a5   : > { %1543 = dma.done.wait (%p2021_p7), [#allocation10], 192   ;;  %p2022_p10 = pmov %p2018_p3 }
 0x1a7   : > { %1545 = vsyncadd (%p2022_p10), [#allocation10], 4294967104 }
 0x1a8 PF: > { %s1033_s30 = sand.u32 1, %s1552_s18   ;;  %p2023_p0 = scmp.ne.s32.totalorder %s2003_s25, 0 }
 0x1a9   : > { %p2024_p11 = scmp.ge.s32.totalorder %s1564_s21, 2  ;;  %s1034_s24 = scalar_lea.sflag [#allocation4], %s1033_s30 }
 0x1ab   : > { %p1232_p3 = pnand %p2024_p11, %p2023_p0 }
 0x1ad   : > { %p1233_p4 = pneg %p1232_p3 }
 0x1af   : > { %1547 = dma.done.wait (%p1233_p4), %s1034_s24, 1536  }
 0x1b0   : > { %1549 = vsyncadd (%p1233_p4), %s1034_s24, 4294965760  ;;  %p21_p9 = scmp.ge.s32.totalorder %s1685_s15, 4   ;;  %s2025_s18 = smov %s1556_s19 }
 0x1b1   : > { %s2026_s19 = smov %s1560_s20  ;;  %s2027_s20 = smov %s1701_s27 }
 0x1b2   : > { %s2028_s21 = smov %s1685_s15  ;;  %23 = sbr.rel (!%p21_p9) target bundleno = 7 (0x7), region = 105 }
 0x1b7   :  { %1039 = vsyncpa [#allocation3], 1 }
 0x1b8   :  { %1041 = vsyncpa [#allocation3 + $0x1], 1 }
 0x1b9   :  { %1042 = vsyncpa [#allocation6], 1 }
 0x1ba   :  { %1043 = vsyncpa [#allocation4], 1 }
 0x1bb   :  { %1045 = vsyncpa [#allocation4 + $0x1], 1 }
 0x1bc   :  { %1046 = vsyncpa [#allocation10], 1 }

</bundles_post_ra>
